<compile_context>
chip_gen: v5e
topology: v5e:2x2
jax: 0.10.0
libtpu: 0.0.40
codegen_flags: <defaults>
</compile_context>

<pallas_src>
import functools
import math

import jax
import jax.numpy as jnp
from jax.experimental import pallas as pl
from jax.experimental.pallas import tpu as pltpu

_OUT_DTYPE = jnp.float32            # type_='float32'
_VMEM_LIMIT = 32 * 1024 * 1024      # explicit: > v5e's 16 MiB scoped default
_BLOCK_BYTES = 4 << 20              # ~4 MiB per output block buffer
_WHOLE_LIMIT = 4 << 20              # max f32 output bytes for single-block odd-shape path


def _fill_kernel(val_ref, o_ref):
    """Replace path: write-only broadcast of the chosen scalar value."""
    o_ref[...] = jnp.full(o_ref.shape, val_ref[0], dtype=o_ref.dtype)


def _copy_kernel(x_ref, o_ref):
    """Passthrough path: streaming copy + cast to the output dtype."""
    o_ref[...] = x_ref[...].astype(o_ref.dtype)


def _choose_lanes(total):
    for cand in (1024, 512, 256, 128):
        if total % cand == 0:
            return cand
    return None


def _pick_tr(rows, lanes, block_rows, in_itemsize):
    """Pick the block row count: sublane-aligned, ~4 MiB, >=2 grid steps."""
    sub = max(8, 32 // max(1, in_itemsize))          # f32:8  bf16:16  int8:32
    if block_rows is None:
        block_rows = max(sub, _BLOCK_BYTES // (lanes * 4))
    block_rows = max(sub, (block_rows // sub) * sub)
    if rows > block_rows:
        return block_rows
    # Everything fits in one block: on v7x split into >=2 grid steps so the
    # "parallel" axis can be sharded across both TensorCores (neutral elsewhere).
    if rows > sub:
        half = -(-rows // 2)
        tr = max(sub, -(-half // sub) * sub)
        if tr < rows:
            return tr
    return rows                                      # full-dim block (always legal)


def _fill_call(val_arr, rows, lanes, tr):
    nb = pl.cdiv(rows, tr)
    return pl.pallas_call(
        _fill_kernel,
        out_shape=jax.ShapeDtypeStruct((rows, lanes), _OUT_DTYPE),
        grid=(nb,),
        in_specs=[pl.BlockSpec(memory_space=pltpu.SMEM)],          # scalar value
        out_specs=pl.BlockSpec((tr, lanes), lambda i: (i, 0)),
        compiler_params=pltpu.CompilerParams(
            dimension_semantics=("parallel",),
            vmem_limit_bytes=_VMEM_LIMIT),
        cost_estimate=pl.CostEstimate(
            flops=0, transcendentals=0, bytes_accessed=int(rows * lanes * 4)),
    )(val_arr)


def _copy_call(x2d, tr):
    rows, lanes = x2d.shape
    nb = pl.cdiv(rows, tr)
    spec = pl.BlockSpec((tr, lanes), lambda i: (i, 0))
    nbytes = int(rows * lanes * (x2d.dtype.itemsize + 4))
    return pl.pallas_call(
        _copy_kernel,
        out_shape=jax.ShapeDtypeStruct((rows, lanes), _OUT_DTYPE),
        grid=(nb,),
        in_specs=[spec],
        out_specs=spec,
        compiler_params=pltpu.CompilerParams(
            dimension_semantics=("parallel",),
            vmem_limit_bytes=_VMEM_LIMIT),
        cost_estimate=pl.CostEstimate(
            flops=0, transcendentals=0, bytes_accessed=nbytes),
    )(x2d)


@functools.partial(
    jax.jit, static_argnames=("probability", "values", "lanes", "block_rows"))
def random_replace(x, key, probability=1.0, values=(0.0, 1.0),
                   lanes=None, block_rows=None):
    """JAX/Pallas equivalent of RandomReplacer.forward (type_='float32')."""
    shape = x.shape
    total = math.prod(shape)

    # ---- layout plumbing: lane-dense 2-D slab, no host-side pad on hot paths
    if lanes is None or total % lanes != 0:
        lanes = _choose_lanes(total)
    pad = 0
    if lanes is not None:
        rows = total // lanes
        x2d = x.reshape(rows, lanes)                  # free metadata reshape
    elif total * 4 <= _WHOLE_LIMIT:
        # Odd (non-multiple-of-128) but small: single full-array block.
        lanes, rows = total, 1
        x2d = x.reshape(1, total)
    else:
        # TODO(synk): large tensors whose element count is not a multiple of 128
        # fall back to a host-side pad + final slice (one extra HBM pass each);
        # rare for image-augmentation shapes.
        lanes = 128
        pad = (-total) % lanes
        rows = (total + pad) // lanes
        x2d = None                                    # built lazily in copy_fn
    tr = _pick_tr(rows, lanes, block_rows, x.dtype.itemsize)

    def fill_fn():
        return _fill_call(val_arr, rows, lanes, tr)   # never reads x

    def copy_fn():
        src = x2d
        if src is None:
            src = jnp.pad(x.reshape(-1), (0, pad)).reshape(rows, lanes)
        return _copy_call(src, tr)

    def post(y2d):
        if pad:
            return y2d.reshape(-1)[:total].reshape(shape)
        return y2d.reshape(shape)

    # ---- static passthrough: probability <= 0 never replaces -----------------
    if float(probability) <= 0.0:
        if x.dtype == _OUT_DTYPE:
            return x                                  # .to(float32) is a no-op
        return post(copy_fn())                        # streaming cast only

    # ---- RNG glue (mirrors torch.rand(1) gate + torch.randint value pick) ----
    k_gate, k_idx = jax.random.split(key)
    vals = jnp.asarray(values, dtype=jnp.float32)
    chosen = vals[jax.random.randint(k_idx, (), 0, len(values))]
    val_arr = jnp.reshape(chosen, (1,))

    # ---- static replace: probability >= 1 always fires; skip the gate draw ---
    if float(probability) >= 1.0:
        return post(fill_fn())

    # ---- dynamic gate: branch at the JAX level ------------------------------
    u = jax.random.uniform(k_gate, (), dtype=jnp.float32)
    replace = jnp.float32(probability) > u
    if x.dtype == _OUT_DTYPE and x2d is not None:
        passthrough_fn = lambda: x2d                  # zero-copy identity branch
    else:
        passthrough_fn = copy_fn
    return post(jax.lax.cond(replace, fill_fn, passthrough_fn))


def _reference(x, key, probability, values):
    """Pure-JAX reference using the same RNG draws as the wrapper."""
    k_gate, k_idx = jax.random.split(key)
    u = jax.random.uniform(k_gate, (), dtype=jnp.float32)
    idx = jax.random.randint(k_idx, (), 0, len(values))
    chosen = jnp.asarray(values, jnp.float32)[idx]
    replaced = jnp.full(x.shape, chosen, jnp.float32)
    return jnp.where(jnp.float32(probability) > u, replaced, x.astype(jnp.float32))


if __name__ == "__main__":
    key = jax.random.PRNGKey(0)
    k_data, k1, k2, k3 = jax.random.split(key, 4)

    # Small NCHW input consistent with an RGB-ish image augmentation module.
    x = jax.random.normal(k_data, (2, 4, 16, 16), dtype=jnp.float32)

    # 1) Static replace (p=1.0): write-only tiled fill kernel, no gate RNG.
    out1 = jax.block_until_ready(
        random_replace(x, k1, probability=1.0, values=(0.0, 1.0)))
    ref1 = _reference(x, k1, 1.0, (0.0, 1.0))
    assert out1.shape == x.shape and out1.dtype == jnp.float32
    assert jnp.allclose(out1, ref1), "replace-branch mismatch vs. reference"

    # 2) Static passthrough (p=0.0, f32 input): zero-copy, no kernel at all.
    out2 = jax.block_until_ready(
        random_replace(x, k2, probability=0.0, values=(0.5, 2.0)))
    assert out2.dtype == jnp.float32
    assert jnp.allclose(out2, x), "zero-copy passthrough mismatch"

    # 3) Static passthrough with cast (p=0.0, bf16 input): streaming cast kernel.
    xb = x.astype(jnp.bfloat16)
    out3 = jax.block_until_ready(
        random_replace(xb, k2, probability=0.0, values=(0.5, 2.0)))
    assert out3.dtype == jnp.float32
    assert jnp.allclose(out3, xb.astype(jnp.float32)), "cast passthrough mismatch"

    # 4) Dynamic gate (0<p<1, f32): lax.cond of fill kernel vs. identity.
    out4 = jax.block_until_ready(
        random_replace(x, k3, probability=0.5, values=(-1.0, 3.0)))
    ref4 = _reference(x, k3, 0.5, (-1.0, 3.0))
    assert jnp.allclose(out4, ref4), "dynamic-gate (f32) mismatch vs. reference"

    # 4b) Dynamic gate with bf16 input: lax.cond of fill kernel vs. cast kernel.
    out4b = jax.block_until_ready(
        random_replace(xb, k3, probability=0.5, values=(-1.0, 3.0)))
    ref4b = _reference(xb, k3, 0.5, (-1.0, 3.0))
    assert jnp.allclose(out4b, ref4b), "dynamic-gate (bf16) mismatch vs. reference"

    # 5) Multi-block pipelined path (grid > 1, both-TC-friendly tiling).
    out5 = jax.block_until_ready(
        random_replace(x, k1, probability=1.0, values=(0.0, 1.0),
                       lanes=128, block_rows=8))
    assert jnp.allclose(out5, ref1), "tiled multi-block mismatch vs. reference"

    # 6) Odd (non-multiple-of-128) shape: single full-array block, no pad/slice.
    x_odd = jax.random.normal(k_data, (1, 3, 5, 7), dtype=jnp.float32)
    out6 = jax.block_until_ready(
        random_replace(x_odd, k1, probability=1.0, values=(0.0, 1.0)))
    ref6 = _reference(x_odd, k1, 1.0, (0.0, 1.0))
    assert out6.shape == x_odd.shape
    assert jnp.allclose(out6, ref6), "odd-shape whole-array mismatch vs. reference"

    print("KERNEL_OK")
</pallas_src>

<mosaic_0001>
module attributes {stable_mosaic.version = 11 : i64} {
  func.func @_fill_kernel(%arg0: i32, %arg1: memref<1xf32, #tpu.memory_space<smem>>, %arg2: memref<2x1024xf32, #tpu.memory_space<vmem>>) attributes {dimension_semantics = [#tpu.dimension_semantics<parallel>], iteration_bounds = array<i64: 1>, scalar_prefetch = 0 : i64, scratch_operands = 0 : i64, tpu.core_type = #tpu.core_type<tc>, window_params = [{transform_indices = @transform_0, window_bounds = array<i64: 1>}, {transform_indices = @transform_1, window_bounds = array<i64: 2, 1024>}]} {
    %c0 = arith.constant 0 : index
    %0 = memref.load %arg1[%c0] : memref<1xf32, #tpu.memory_space<smem>>
    %1 = vector.broadcast %0 : f32 to vector<2x1024xf32>
    %c0_0 = arith.constant 0 : index
    %c0_1 = arith.constant 0 : index
    %2 = vector.load %arg2[%c0_0, %c0_1] : memref<2x1024xf32, #tpu.memory_space<vmem>>, vector<2x1024xf32>
    tpu.vector_store %arg2[%c0_0, %c0_1], %1 {strides = array<i32>} : memref<2x1024xf32, #tpu.memory_space<vmem>>, vector<2x1024xf32>,
    return
  }
  func.func @transform_0(%arg0: i32) -> i32 {
    %c0_i32 = arith.constant 0 : i32
    %c0_i32_0 = arith.constant 0 : i32
    return %c0_i32 : i32
  }
  func.func @transform_1(%arg0: i32) -> (i32, i32) {
    %c0_i32 = arith.constant 0 : i32
    %c0_i32_0 = arith.constant 0 : i32
    return %arg0, %c0_i32 : i32, i32
  }
}

</mosaic_0001>

<bundles_post_ra>
// kernel: random_replace.1
= control target key start
LH: loop header
LB: loop body
LE: loop exit
PB: predicated region body
PF: predicated region fallthrough
CT: control target
= control target key end

     0   :  { %s36_s0 = inlined_call_operand.<no memory space> [shape: f32[1], index: 0, kind: input, shape index: {}]   ;;  %s37_s1 = inlined_call_operand.vmem [shape: f32[2,1024], index: 1, kind: output, shape index: {}]  }
   0x1   :  { %v10_v0 = vstv %s36_s0 }
   0x2   :  { %11 = vst [vmem:[%s37_s1] sm:$0xff] %v10_v0 }
   0x3   :  { %12 = vst [vmem:[%s37_s1 + $0x8] sm:$0xff] %v10_v0 }

</bundles_post_ra>
